<compile_context>
chip_gen: v6e
topology: v6e:2x2x1
jax: 0.10.0
libtpu: 0.0.40
codegen_flags: <defaults>
</compile_context>

<pallas_src>
import math
import jax
import jax.numpy as jnp
from jax.experimental import pallas as pl
from jax.experimental.pallas import tpu as pltpu


def _round_up(v, m):
    return (v + m - 1) // m * m


def _pick_tile(n_p, target, *, at_least_two_tiles=False):
    """Largest multiple-of-128 divisor of n_p that is <= target.

    With at_least_two_tiles, also cap at n_p//2 (when n_p >= 256) so the
    'parallel' row axis has >= 2 tiles (keeps both v7x TensorCores busy).
    """
    cap = target
    if at_least_two_tiles and n_p >= 256:
        cap = min(cap, n_p // 2)
    units = n_p // 128
    best = 128
    for m in range(1, units + 1):
        if units % m == 0 and m * 128 <= cap:
            best = m * 128
    return best


def _make_gcn_kernel(x_resident, tile_k, compute_dtype):
    """Kernel for one (row-tile i, reduction-tile k) step of (A @ X) @ W^T + b."""

    def kernel(adj_ref, x_ref, w_ref, b_ref, out_ref, acc_ref):
        # adj_ref: (tm, tk)          adjacency tile, native dtype (cast in-kernel)
        # x_ref:   (n_p, F_in_p) if resident else (tk, F_in_p), compute dtype
        # w_ref:   (F_in_p, F_out_p) pre-transposed weight (VMEM-resident)
        # b_ref:   (1, F_out_p)      bias, f32
        # out_ref: (tm, F_out_p)     output row tile
        # acc_ref: (tm, F_in_p)      f32 accumulator for support = A @ X
        k = pl.program_id(1)

        @pl.when(k == 0)
        def _():
            acc_ref[...] = jnp.zeros_like(acc_ref)

        a_tile = adj_ref[...].astype(compute_dtype)  # VPU cast; no-op if already
        if x_resident:
            start = pl.multiple_of(k * tile_k, tile_k)
            x_tile = x_ref[pl.ds(start, tile_k), :]
        else:
            x_tile = x_ref[...]

        # support += A_tile @ X_tile   (MXU, f32 accumulate)
        acc_ref[...] += jnp.dot(a_tile, x_tile, preferred_element_type=jnp.float32)

        @pl.when(k == pl.num_programs(1) - 1)
        def _():
            # Linear epilogue: support @ W^T + b (W already transposed in wrapper).
            support = acc_ref[...].astype(w_ref.dtype)
            out = jnp.dot(support, w_ref[...], preferred_element_type=jnp.float32)
            out_ref[...] = (out + b_ref[...]).astype(out_ref.dtype)

    return kernel


def graph_convolution(x, adjacency, weight, bias, *,
                      compute_dtype=jnp.bfloat16,
                      out_dtype=None,
                      tile_m=512,            # v5e MXU-bound regimes may prefer 256
                      tile_k=1024,
                      x_resident_max_bytes=8 * 1024 * 1024,
                      single_buffer_resident=True):
    """x: (N, F_in), adjacency: (N, N), weight: (F_out, F_in), bias: (F_out,).

    Returns (N, F_out) in `out_dtype` (default x.dtype). MXU operands run in
    `compute_dtype` (default bf16) with f32 accumulation.
    """
    n, f_in = x.shape
    f_out, f_in_w = weight.shape
    assert f_in_w == f_in, "weight must be (F_out, F_in)"
    assert adjacency.shape == (n, n), "adjacency must be (N, N)"
    if out_dtype is None:
        out_dtype = x.dtype

    # Lane-dense padding: feature dims and node dim -> multiples of 128.
    f_in_p = _round_up(f_in, 128)
    f_out_p = _round_up(f_out, 128)
    n_p = _round_up(n, 128)

    tile_k = _pick_tile(n_p, tile_k)
    tile_m = _pick_tile(n_p, tile_m, at_least_two_tiles=True)

    # Adjacency: avoid the wrapper-side pad/cast copy of the largest operand
    # when N is already aligned -- stream it in its native dtype and cast tiles
    # in-kernel. Otherwise fuse pad+cast into one copy (zero padding keeps the
    # padded reduction exact).
    if n_p == n:
        adj_in = adjacency
    else:
        adj_in = jnp.pad(adjacency, ((0, n_p - n), (0, n_p - n))).astype(compute_dtype)

    # X / W / bias are small relative to A; pad & cast once in the wrapper.
    x_p = x
    if (n_p, f_in_p) != (n, f_in):
        x_p = jnp.pad(x, ((0, n_p - n), (0, f_in_p - f_in)))
    x_p = x_p.astype(compute_dtype)

    w_t = weight.T  # nn.Linear weight (F_out, F_in) -> (F_in, F_out), transposed once
    if (f_in_p, f_out_p) != (f_in, f_out):
        w_t = jnp.pad(w_t, ((0, f_in_p - f_in), (0, f_out_p - f_out)))
    w_t = w_t.astype(compute_dtype)

    b_p = jnp.pad(bias, (0, f_out_p - f_out)).astype(jnp.float32).reshape(1, f_out_p)

    comp_item = jnp.dtype(compute_dtype).itemsize
    adj_item = jnp.dtype(adj_in.dtype).itemsize
    out_item = jnp.dtype(out_dtype).itemsize

    x_bytes = n_p * f_in_p * comp_item
    x_resident = x_bytes <= x_resident_max_bytes

    grid = (n_p // tile_m, n_p // tile_k)   # (row tiles, reduction tiles) — reduction last
    n_row_tiles = grid[0]

    kernel = _make_gcn_kernel(x_resident, tile_k, compute_dtype)

    cost = pl.CostEstimate(
        flops=2 * n_p * n_p * f_in_p + 2 * n_p * f_in_p * f_out_p,
        transcendentals=0,
        bytes_accessed=(n_p * n_p * adj_item
                        + (1 if x_resident else n_row_tiles) * x_bytes
                        + f_in_p * f_out_p * comp_item
                        + f_out_p * 4
                        + n_p * f_out_p * out_item),
    )

    # Explicit scoped-VMEM limit (v5e default is only 16 MiB; v7x physical 64 MiB).
    footprint = (2 * tile_m * tile_k * adj_item                              # A tiles (2 bufs)
                 + 2 * (n_p if x_resident else tile_k) * f_in_p * comp_item  # X
                 + 2 * f_in_p * f_out_p * comp_item                          # resident W^T
                 + 2 * f_out_p * 4                                           # bias
                 + 2 * tile_m * f_out_p * out_item                           # output tile
                 + tile_m * f_in_p * 4)                                      # f32 accumulator
    try:
        vmem_cap = pltpu.get_tpu_info().vmem_capacity_bytes
    except Exception:
        vmem_cap = 64 * 1024 * 1024  # assume v7x worst case if query unavailable
    vmem_limit = int(min(max(footprint + (4 << 20), 32 << 20), int(0.85 * vmem_cap)))

    # TODO(synk): for very large F_in*F_out (W^T approaching the v7x VMEM limit),
    # add a third grid axis tiling F_out instead of keeping W^T fully resident.

    def _spec(shape, index_map, pm):
        if pm is None:
            return pl.BlockSpec(shape, index_map)
        return pl.BlockSpec(shape, index_map, pipeline_mode=pm)

    def run(use_single_buffer):
        pm = pl.Buffered(1) if use_single_buffer else None
        if x_resident:
            x_spec = _spec((n_p, f_in_p), lambda i, k: (0, 0), pm)
        else:
            x_spec = pl.BlockSpec((tile_k, f_in_p), lambda i, k: (k, 0))
        in_specs = [
            pl.BlockSpec((tile_m, tile_k), lambda i, k: (i, k)),       # adjacency tile
            x_spec,                                                    # X (resident or tiled)
            _spec((f_in_p, f_out_p), lambda i, k: (0, 0), pm),         # W^T (resident)
            _spec((1, f_out_p), lambda i, k: (0, 0), pm),              # bias (resident)
        ]
        return pl.pallas_call(
            kernel,
            out_shape=jax.ShapeDtypeStruct((n_p, f_out_p), out_dtype),
            grid=grid,
            in_specs=in_specs,
            out_specs=pl.BlockSpec((tile_m, f_out_p), lambda i, k: (i, 0)),
            scratch_shapes=[pltpu.VMEM((tile_m, f_in_p), jnp.float32)],
            compiler_params=pltpu.CompilerParams(
                dimension_semantics=("parallel", "arbitrary"),
                vmem_limit_bytes=vmem_limit,
            ),
            cost_estimate=cost,
        )(adj_in, x_p, w_t, b_p)

    if single_buffer_resident:
        try:
            out_p = run(True)
        except Exception:
            # Backend rejected pl.Buffered(1); fall back to default double-buffering.
            out_p = run(False)
    else:
        out_p = run(False)

    return out_p[:n, :f_out]


def reference(x, adjacency, weight, bias):
    support = adjacency @ x
    return support @ weight.T + bias


if __name__ == "__main__":
    # Small shapes consistent with the module's forward.
    num_nodes = 16
    in_features = 32
    out_features = 64

    key = jax.random.PRNGKey(0)
    kx, kadj, kw, kb = jax.random.split(key, 4)

    x = jax.random.normal(kx, (num_nodes, in_features), dtype=jnp.float32)
    adjacency = jax.random.normal(kadj, (num_nodes, num_nodes), dtype=jnp.float32)

    # Deterministic nn.Linear-style init: U(-1/sqrt(F_in), 1/sqrt(F_in))
    bound = 1.0 / math.sqrt(in_features)
    weight = jax.random.uniform(
        kw, (out_features, in_features), dtype=jnp.float32, minval=-bound, maxval=bound
    )
    bias = jax.random.uniform(
        kb, (out_features,), dtype=jnp.float32, minval=-bound, maxval=bound
    )

    ref = reference(x, adjacency, weight, bias)

    # f32-operand path: tight semantic check.
    out_f32 = jax.block_until_ready(
        graph_convolution(x, adjacency, weight, bias, compute_dtype=jnp.float32)
    )
    assert out_f32.shape == (num_nodes, out_features)
    assert jnp.allclose(out_f32, ref, atol=1e-4, rtol=1e-4), "f32 path mismatch"

    # Default bf16-operand / f32-accumulate path (MXU-native, perf path).
    out_bf16 = jax.block_until_ready(graph_convolution(x, adjacency, weight, bias))
    assert out_bf16.shape == (num_nodes, out_features)
    assert jnp.allclose(out_bf16, ref, atol=1e-1, rtol=1e-1), "bf16 path mismatch"

    print("KERNEL_OK")
</pallas_src>

<mosaic_0001>
module attributes {stable_mosaic.version = 11 : i64} {
  func.func @kernel(%arg0: i32, %arg1: i32, %arg2: memref<128x128xf32, #tpu.memory_space<vmem>>, %arg3: memref<128x128xf32, #tpu.memory_space<vmem>>, %arg4: memref<128x128xf32, #tpu.memory_space<vmem>>, %arg5: memref<1x128xf32, #tpu.memory_space<vmem>>, %arg6: memref<128x128xf32, #tpu.memory_space<vmem>>, %arg7: memref<128x128xf32, #tpu.memory_space<vmem>>) attributes {dimension_semantics = [#tpu.dimension_semantics<parallel>, #tpu.dimension_semantics<arbitrary>], iteration_bounds = array<i64: 1, 1>, scalar_prefetch = 0 : i64, scratch_operands = 1 : i64, tpu.core_type = #tpu.core_type<tc>, window_params = [{transform_indices = @transform_0, window_bounds = array<i64: 128, 128>}, {pipeline_mode = #tpu.pipeline_mode<synchronous>, transform_indices = @transform_1, window_bounds = array<i64: 128, 128>}, {pipeline_mode = #tpu.pipeline_mode<synchronous>, transform_indices = @transform_2, window_bounds = array<i64: 128, 128>}, {pipeline_mode = #tpu.pipeline_mode<synchronous>, transform_indices = @transform_3, window_bounds = array<i64: 1, 128>}, {transform_indices = @transform_4, window_bounds = array<i64: 128, 128>}]} {
    %c0_i32 = arith.constant 0 : i32
    %0 = arith.cmpi eq, %arg1, %c0_i32 : i32
    %1 = arith.extui %0 : i1 to i32
    %c0_i32_0 = arith.constant 0 : i32
    %2 = arith.cmpi ne, %1, %c0_i32_0 : i32
    scf.if %2 {
      %cst_9 = arith.constant 0.000000e+00 : f32
      %15 = vector.broadcast %cst_9 : f32 to vector<128x128xf32>
      %c0_10 = arith.constant 0 : index
      %c0_11 = arith.constant 0 : index
      %16 = vector.load %arg7[%c0_10, %c0_11] : memref<128x128xf32, #tpu.memory_space<vmem>>, vector<128x128xf32>
      tpu.vector_store %arg7[%c0_10, %c0_11], %15 {strides = array<i32>} : memref<128x128xf32, #tpu.memory_space<vmem>>, vector<128x128xf32>,
    } else {
    }
    %c0 = arith.constant 0 : index
    %c0_1 = arith.constant 0 : index
    %3 = vector.load %arg2[%c0, %c0_1] : memref<128x128xf32, #tpu.memory_space<vmem>>, vector<128x128xf32>
    %c128_i32 = arith.constant 128 : i32
    %4 = arith.muli %arg1, %c128_i32 : i32
    %5 = tpu.assume_multiple %4, 128 : i32
    %6 = arith.index_cast %5 : i32 to index
    %c0_2 = arith.constant 0 : index
    %7 = vector.load %arg3[%6, %c0_2] : memref<128x128xf32, #tpu.memory_space<vmem>>, vector<128x128xf32>
    %c0_3 = arith.constant 0 : index
    %c0_4 = arith.constant 0 : index
    %8 = vector.load %arg7[%c0_3, %c0_4] : memref<128x128xf32, #tpu.memory_space<vmem>>, vector<128x128xf32>
    %cst = arith.constant dense<0.000000e+00> : vector<128x128xf32>
    %9 = tpu.matmul %3, %7, %cst {dimension_numbers = #tpu.dot_dimension_numbers<[1], [0], [0], [1], [0, 0, 1, 1], [], []>} : vector<128x128xf32>, vector<128x128xf32>, vector<128x128xf32> -> vector<128x128xf32>
    %10 = arith.addf %8, %9 : vector<128x128xf32>
    %c0_5 = arith.constant 0 : index
    %c0_6 = arith.constant 0 : index
    %11 = vector.load %arg7[%c0_5, %c0_6] : memref<128x128xf32, #tpu.memory_space<vmem>>, vector<128x128xf32>
    tpu.vector_store %arg7[%c0_5, %c0_6], %10 {strides = array<i32>} : memref<128x128xf32, #tpu.memory_space<vmem>>, vector<128x128xf32>,
    %c0_i32_7 = arith.constant 0 : i32
    %12 = arith.cmpi eq, %arg1, %c0_i32_7 : i32
    %13 = arith.extui %12 : i1 to i32
    %c0_i32_8 = arith.constant 0 : i32
    %14 = arith.cmpi ne, %13, %c0_i32_8 : i32
    scf.if %14 {
      %c0_9 = arith.constant 0 : index
      %c0_10 = arith.constant 0 : index
      %15 = vector.load %arg7[%c0_9, %c0_10] : memref<128x128xf32, #tpu.memory_space<vmem>>, vector<128x128xf32>
      %c0_11 = arith.constant 0 : index
      %c0_12 = arith.constant 0 : index
      %16 = vector.load %arg4[%c0_11, %c0_12] : memref<128x128xf32, #tpu.memory_space<vmem>>, vector<128x128xf32>
      %cst_13 = arith.constant dense<0.000000e+00> : vector<128x128xf32>
      %17 = tpu.matmul %15, %16, %cst_13 {dimension_numbers = #tpu.dot_dimension_numbers<[1], [0], [0], [1], [0, 0, 1, 1], [], []>} : vector<128x128xf32>, vector<128x128xf32>, vector<128x128xf32> -> vector<128x128xf32>
      %c0_14 = arith.constant 0 : index
      %c0_15 = arith.constant 0 : index
      %18 = vector.load %arg5[%c0_14, %c0_15] : memref<1x128xf32, #tpu.memory_space<vmem>>, vector<1x128xf32>
      %19 = vector.broadcast %18 : vector<1x128xf32> to vector<128x128xf32>
      %20 = arith.addf %17, %19 : vector<128x128xf32>
      %c0_16 = arith.constant 0 : index
      %c0_17 = arith.constant 0 : index
      %21 = vector.load %arg6[%c0_16, %c0_17] : memref<128x128xf32, #tpu.memory_space<vmem>>, vector<128x128xf32>
      tpu.vector_store %arg6[%c0_16, %c0_17], %20 {strides = array<i32>} : memref<128x128xf32, #tpu.memory_space<vmem>>, vector<128x128xf32>,
    } else {
    }
    return
  }
  func.func @transform_0(%arg0: i32, %arg1: i32) -> (i32, i32) {
    %c0_i32 = arith.constant 0 : i32
    return %arg0, %arg1 : i32, i32
  }
  func.func @transform_1(%arg0: i32, %arg1: i32) -> (i32, i32) {
    %c0_i32 = arith.constant 0 : i32
    %c0_i32_0 = arith.constant 0 : i32
    %c0_i32_1 = arith.constant 0 : i32
    return %c0_i32, %c0_i32_0 : i32, i32
  }
  func.func @transform_2(%arg0: i32, %arg1: i32) -> (i32, i32) {
    %c0_i32 = arith.constant 0 : i32
    %c0_i32_0 = arith.constant 0 : i32
    %c0_i32_1 = arith.constant 0 : i32
    return %c0_i32, %c0_i32_0 : i32, i32
  }
  func.func @transform_3(%arg0: i32, %arg1: i32) -> (i32, i32) {
    %c0_i32 = arith.constant 0 : i32
    %c0_i32_0 = arith.constant 0 : i32
    %c0_i32_1 = arith.constant 0 : i32
    return %c0_i32, %c0_i32_0 : i32, i32
  }
  func.func @transform_4(%arg0: i32, %arg1: i32) -> (i32, i32) {
    %c0_i32 = arith.constant 0 : i32
    %c0_i32_0 = arith.constant 0 : i32
    return %arg0, %c0_i32 : i32, i32
  }
}

module attributes {stable_mosaic.version = 11 : i64} {
  func.func @kernel(%arg0: i32, %arg1: i32, %arg2: memref<128x128xf32, #tpu.memory_space<vmem>>, %arg3: memref<128x128xf32, #tpu.memory_space<vmem>>, %arg4: memref<128x128xf32, #tpu.memory_space<vmem>>, %arg5: memref<1x128xf32, #tpu.memory_space<vmem>>, %arg6: memref<128x128xf32, #tpu.memory_space<vmem>>, %arg7: memref<128x128xf32, #tpu.memory_space<vmem>>) attributes {dimension_semantics = [#tpu.dimension_semantics<parallel>, #tpu.dimension_semantics<arbitrary>], iteration_bounds = array<i64: 1, 1>, scalar_prefetch = 0 : i64, scratch_operands = 1 : i64, tpu.core_type = #tpu.core_type<tc>, window_params = [{transform_indices = @transform_0, window_bounds = array<i64: 128, 128>}, {pipeline_mode = #tpu.pipeline_mode<synchronous>, transform_indices = @transform_1, window_bounds = array<i64: 128, 128>}, {pipeline_mode = #tpu.pipeline_mode<synchronous>, transform_indices = @transform_2, window_bounds = array<i64: 128, 128>}, {pipeline_mode = #tpu.pipeline_mode<synchronous>, transform_indices = @transform_3, window_bounds = array<i64: 1, 128>}, {transform_indices = @transform_4, window_bounds = array<i64: 128, 128>}]} {
    %c0_i32 = arith.constant 0 : i32
    %0 = arith.cmpi eq, %arg1, %c0_i32 : i32
    %1 = arith.extui %0 : i1 to i32
    %c0_i32_0 = arith.constant 0 : i32
    %2 = arith.cmpi ne, %1, %c0_i32_0 : i32
    scf.if %2 {
      %cst_9 = arith.constant 0.000000e+00 : f32
      %15 = vector.broadcast %cst_9 : f32 to vector<128x128xf32>
      %c0_10 = arith.constant 0 : index
      %c0_11 = arith.constant 0 : index
      %16 = vector.load %arg7[%c0_10, %c0_11] : memref<128x128xf32, #tpu.memory_space<vmem>>, vector<128x128xf32>
      tpu.vector_store %arg7[%c0_10, %c0_11], %15 {strides = array<i32>} : memref<128x128xf32, #tpu.memory_space<vmem>>, vector<128x128xf32>,
    } else {
    }
    %c0 = arith.constant 0 : index
    %c0_1 = arith.constant 0 : index
    %3 = vector.load %arg2[%c0, %c0_1] : memref<128x128xf32, #tpu.memory_space<vmem>>, vector<128x128xf32>
    %c128_i32 = arith.constant 128 : i32
    %4 = arith.muli %arg1, %c128_i32 : i32
    %5 = tpu.assume_multiple %4, 128 : i32
    %6 = arith.index_cast %5 : i32 to index
    %c0_2 = arith.constant 0 : index
    %7 = vector.load %arg3[%6, %c0_2] : memref<128x128xf32, #tpu.memory_space<vmem>>, vector<128x128xf32>
    %c0_3 = arith.constant 0 : index
    %c0_4 = arith.constant 0 : index
    %8 = vector.load %arg7[%c0_3, %c0_4] : memref<128x128xf32, #tpu.memory_space<vmem>>, vector<128x128xf32>
    %cst = arith.constant dense<0.000000e+00> : vector<128x128xf32>
    %9 = tpu.matmul %3, %7, %cst {dimension_numbers = #tpu.dot_dimension_numbers<[1], [0], [0], [1], [0, 0, 1, 1], [], []>} : vector<128x128xf32>, vector<128x128xf32>, vector<128x128xf32> -> vector<128x128xf32>
    %10 = arith.addf %8, %9 : vector<128x128xf32>
    %c0_5 = arith.constant 0 : index
    %c0_6 = arith.constant 0 : index
    %11 = vector.load %arg7[%c0_5, %c0_6] : memref<128x128xf32, #tpu.memory_space<vmem>>, vector<128x128xf32>
    tpu.vector_store %arg7[%c0_5, %c0_6], %10 {strides = array<i32>} : memref<128x128xf32, #tpu.memory_space<vmem>>, vector<128x128xf32>,
    %c0_i32_7 = arith.constant 0 : i32
    %12 = arith.cmpi eq, %arg1, %c0_i32_7 : i32
    %13 = arith.extui %12 : i1 to i32
    %c0_i32_8 = arith.constant 0 : i32
    %14 = arith.cmpi ne, %13, %c0_i32_8 : i32
    scf.if %14 {
      %c0_9 = arith.constant 0 : index
      %c0_10 = arith.constant 0 : index
      %15 = vector.load %arg7[%c0_9, %c0_10] : memref<128x128xf32, #tpu.memory_space<vmem>>, vector<128x128xf32>
      %c0_11 = arith.constant 0 : index
      %c0_12 = arith.constant 0 : index
      %16 = vector.load %arg4[%c0_11, %c0_12] : memref<128x128xf32, #tpu.memory_space<vmem>>, vector<128x128xf32>
      %cst_13 = arith.constant dense<0.000000e+00> : vector<128x128xf32>
      %17 = tpu.matmul %15, %16, %cst_13 {dimension_numbers = #tpu.dot_dimension_numbers<[1], [0], [0], [1], [0, 0, 1, 1], [], []>} : vector<128x128xf32>, vector<128x128xf32>, vector<128x128xf32> -> vector<128x128xf32>
      %c0_14 = arith.constant 0 : index
      %c0_15 = arith.constant 0 : index
      %18 = vector.load %arg5[%c0_14, %c0_15] : memref<1x128xf32, #tpu.memory_space<vmem>>, vector<1x128xf32>
      %19 = vector.broadcast %18 : vector<1x128xf32> to vector<128x128xf32>
      %20 = arith.addf %17, %19 : vector<128x128xf32>
      %c0_16 = arith.constant 0 : index
      %c0_17 = arith.constant 0 : index
      %21 = vector.load %arg6[%c0_16, %c0_17] : memref<128x128xf32, #tpu.memory_space<vmem>>, vector<128x128xf32>
      tpu.vector_store %arg6[%c0_16, %c0_17], %20 {strides = array<i32>} : memref<128x128xf32, #tpu.memory_space<vmem>>, vector<128x128xf32>,
    } else {
    }
    return
  }
  func.func @transform_0(%arg0: i32, %arg1: i32) -> (i32, i32) {
    %c0_i32 = arith.constant 0 : i32
    return %arg0, %arg1 : i32, i32
  }
  func.func @transform_1(%arg0: i32, %arg1: i32) -> (i32, i32) {
    %c0_i32 = arith.constant 0 : i32
    %c0_i32_0 = arith.constant 0 : i32
    %c0_i32_1 = arith.constant 0 : i32
    return %c0_i32, %c0_i32_0 : i32, i32
  }
  func.func @transform_2(%arg0: i32, %arg1: i32) -> (i32, i32) {
    %c0_i32 = arith.constant 0 : i32
    %c0_i32_0 = arith.constant 0 : i32
    %c0_i32_1 = arith.constant 0 : i32
    return %c0_i32, %c0_i32_0 : i32, i32
  }
  func.func @transform_3(%arg0: i32, %arg1: i32) -> (i32, i32) {
    %c0_i32 = arith.constant 0 : i32
    %c0_i32_0 = arith.constant 0 : i32
    %c0_i32_1 = arith.constant 0 : i32
    return %c0_i32, %c0_i32_0 : i32, i32
  }
  func.func @transform_4(%arg0: i32, %arg1: i32) -> (i32, i32) {
    %c0_i32 = arith.constant 0 : i32
    %c0_i32_0 = arith.constant 0 : i32
    return %arg0, %c0_i32 : i32, i32
  }
}

</mosaic_0001>

<bundles_post_ra>
// kernel: tpu_custom_call.1
= control target key start
LH: loop header
LB: loop body
LE: loop exit
PB: predicated region body
PF: predicated region fallthrough
CT: control target
= control target key end

     0   :  { %9 = vsyncpa [#allocation4], 0  ;;  %s854_s0 = inlined_call_operand.hbm [shape: f32[128,128], index: 0, kind: input, shape index: {}]   ;;  %s855_s1 = inlined_call_operand.hbm [shape: f32[128,128], index: 1, kind: input, shape index: {}]   ;;  %s856_s2 = inlined_call_operand.hbm [shape: f32[128,128], index: 2, kind: input, shape index: {}]   ;;  %s857_s3 = inlined_call_operand.vmem [shape: f32[1,128], index: 3, kind: input, shape index: {}]   ;;  %s858_s4 = inlined_call_operand.hbm [shape: f32[128,128], index: 4, kind: output, shape index: {}]  }
   0x1   :  { %10 = vsyncpa [#allocation7], 0 }
   0x2   :  { %11 = vsyncpa [#allocation5], 0  ;;  %s796_s15 = smov [#allocation6]   ;;  %s797_s17 = smov [#allocation3]  }
   0x3   :  { %s29_s16 = sshll.u32 %s796_s15, 4  ;;  %s17_s18 = sshll.u32 %s797_s17, 4  ;;  %s30_s16 = int_to_ptr.vmem [resolvable:$true] %s29_s16  ;;  %s18_s18 = int_to_ptr.vmem [resolvable:$true] %s17_s18 }
   0x4   :  { %s718_s19 = scalar_lea.vmem %s30_s16, 2048  ;;  %p723_p1 = scmp.lt.s32.totalorder %s30_s16, %s30_s16 }
   0x5   :  { %p719_p0 = scmp.ne.s32.totalorder %s30_s16, %s718_s19  ;;  %p724_p2 = scmp.lt.s32.totalorder %s718_s19, %s718_s19 }
   0x7   :  { %p725_p3 = por %p724_p2, %p723_p1 }
   0x9   :  { %p726_p4 = pnand %p725_p3, %p719_p0 }
   0xb   :  { %729 = shalt.err (!%p726_p4)
}
   0xc   :  { %s798_s20 = smov 128   ;;  %s799_s21 = smov 8  }
   0xd   :  { %35 = dma.hbm_to_vmem [thread:$0]  %s855_s1, 2048, %s30_s16, [#allocation7], %s798_s20, %s798_s20, %s799_s21  }
   0xe   :  { %s738_s24 = scalar_lea.vmem %s18_s18, 2048  ;;  %p743_p6 = scmp.lt.s32.totalorder %s18_s18, %s18_s18 }
   0xf   :  { %p739_p5 = scmp.ne.s32.totalorder %s18_s18, %s738_s24  ;;  %p744_p7 = scmp.lt.s32.totalorder %s738_s24, %s738_s24 }
  0x11   :  { %p745_p8 = por %p744_p7, %p743_p6 }
  0x13   :  { %p746_p9 = pnand %p745_p8, %p739_p5 }
  0x15   :  { %749 = shalt.err (!%p746_p9)
}
  0x16   :  { %23 = dma.hbm_to_vmem [thread:$0]  %s854_s0, 2048, %s18_s18, [#allocation4], %s798_s20, %s798_s20, %s799_s21  }
  0x17   :  { %s800_s27 = smov [#allocation8]  }
  0x18   :  { %s41_s28 = sshll.u32 %s800_s27, 4  ;;  %s42_s28 = int_to_ptr.vmem [resolvable:$true] %s41_s28 }
  0x19   :  { %s758_s29 = scalar_lea.vmem %s42_s28, 2048  ;;  %p763_p11 = scmp.lt.s32.totalorder %s42_s28, %s42_s28 }
  0x1a   :  { %p759_p10 = scmp.ne.s32.totalorder %s42_s28, %s758_s29  ;;  %p764_p12 = scmp.lt.s32.totalorder %s758_s29, %s758_s29 }
  0x1c   :  { %p765_p13 = por %p764_p12, %p763_p11 }
  0x1e   :  { %p766_p0 = pnand %p765_p13, %p759_p10 }
  0x20   :  { %769 = shalt.err (!%p766_p0)
}
  0x21   :  { %47 = dma.hbm_to_vmem [thread:$0]  %s856_s2, 2048, %s42_s28, [#allocation7], %s798_s20, %s798_s20, %s799_s21  }
  0x22   :  { %790 = dma.done.wait [#allocation4], 2048  }
  0x23   :  { %791 = vsyncadd [#allocation4], 4294965248 }
  0x24   :  { %792 = dma.done.wait [#allocation7], 4096  }
  0x25   :  { %793 = vsyncadd [#allocation7], 4294963200  ;;  %v112_v0 = vld [vmem:[#allocation6 + $0x78] sm:$0xff]  ;;  %v111_v1 = vld [vmem:[#allocation6 + $0x70] sm:$0xff] }
  0x26   :  { %592 = vmatprep.subr.mxu0 %v112_v0  ;;  %v110_v2 = vld [vmem:[#allocation6 + $0x68] sm:$0xff]  ;;  %v109_v3 = vld [vmem:[#allocation6 + $0x60] sm:$0xff]  ;;  %v108_v5 = vld [vmem:[#allocation6 + $0x58] sm:$0xff] }
  0x27   :  { %593 = vmatpush3.msra.mxu0 %v112_v0  ;;  %v79_v4 = vld [vmem:[#allocation3] sm:$0xff]  ;;  %v107_v6 = vld [vmem:[#allocation6 + $0x50] sm:$0xff]  ;;  %v106_v7 = vld [vmem:[#allocation6 + $0x48] sm:$0xff] }
  0x28   :  { %594 = vmatprep.subr.mxu0 %v111_v1  ;;  %624 = vmatprep.mubr.f32.mxu0 %v79_v4  ;;  %v340_v8 = vld [vmem:[#allocation8 + $0x78] sm:$0xff]  ;;  %v339_v9 = vld [vmem:[#allocation8 + $0x70] sm:$0xff]  ;;  %v105_v10 = vld [vmem:[#allocation6 + $0x40] sm:$0xff] }
  0x29   :  { %595 = vmatpush3.msra.mxu0 %v111_v1  ;;  %648 = vmatprep.subr.mxu1 %v340_v8  ;;  %v338_v11 = vld [vmem:[#allocation8 + $0x68] sm:$0xff]  ;;  %v104_v12 = vld [vmem:[#allocation6 + $0x38] sm:$0xff]  ;;  %v337_v13 = vld [vmem:[#allocation8 + $0x60] sm:$0xff] }
  0x2a   :  { %596 = vmatprep.subr.mxu0 %v110_v2  ;;  %649 = vmatpush3.msra.mxu1 %v340_v8  ;;  %v103_v14 = vld [vmem:[#allocation6 + $0x30] sm:$0xff]  ;;  %v336_v15 = vld [vmem:[#allocation8 + $0x58] sm:$0xff]  ;;  %v102_v16 = vld [vmem:[#allocation6 + $0x28] sm:$0xff] }
  0x2b   :  { %597 = vmatpush3.msra.mxu0 %v110_v2  ;;  %650 = vmatprep.subr.mxu1 %v339_v9  ;;  %v335_v17 = vld [vmem:[#allocation8 + $0x50] sm:$0xff]  ;;  %v101_v18 = vld [vmem:[#allocation6 + $0x20] sm:$0xff]  ;;  %v334_v19 = vld [vmem:[#allocation8 + $0x48] sm:$0xff] }
  0x2c   :  { %598 = vmatprep.subr.mxu0 %v109_v3  ;;  %651 = vmatpush3.msra.mxu1 %v339_v9  ;;  %v100_v20 = vld [vmem:[#allocation6 + $0x18] sm:$0xff]  ;;  %v333_v21 = vld [vmem:[#allocation8 + $0x40] sm:$0xff]  ;;  %v99_v22 = vld [vmem:[#allocation6 + $0x10] sm:$0xff] }
  0x2d   :  { %599 = vmatpush3.msra.mxu0 %v109_v3  ;;  %652 = vmatprep.subr.mxu1 %v338_v11  ;;  %v332_v23 = vld [vmem:[#allocation8 + $0x38] sm:$0xff]  ;;  %v98_v24 = vld [vmem:[#allocation6 + $0x8] sm:$0xff]  ;;  %v331_v25 = vld [vmem:[#allocation8 + $0x30] sm:$0xff] }
  0x2e   :  { %600 = vmatprep.subr.mxu0 %v108_v5  ;;  %653 = vmatpush3.msra.mxu1 %v338_v11  ;;  %v97_v26 = vld [vmem:[#allocation6] sm:$0xff]  ;;  %v330_v27 = vld [vmem:[#allocation8 + $0x28] sm:$0xff]  ;;  %v81_v30 = vld [vmem:[#allocation3 + $0x10] sm:$0xff] }
  0x2f   :  { %601 = vmatpush3.msra.mxu0 %v108_v5  ;;  %654 = vmatprep.subr.mxu1 %v337_v13  ;;  %v80_v28 = vld [vmem:[#allocation3 + $0x8] sm:$0xff]  ;;  %v329_v29 = vld [vmem:[#allocation8 + $0x20] sm:$0xff]  ;;  %v328_v31 = vld [vmem:[#allocation8 + $0x18] sm:$0xff] }
  0x30   :  { %602 = vmatprep.subr.mxu0 %v107_v6  ;;  %655 = vmatpush3.msra.mxu1 %v337_v13  ;;  %v82_v32 = vld [vmem:[#allocation3 + $0x18] sm:$0xff]  ;;  %v327_v33 = vld [vmem:[#allocation8 + $0x10] sm:$0xff]  ;;  %v83_v34 = vld [vmem:[#allocation3 + $0x20] sm:$0xff] }
  0x31   :  { %603 = vmatpush3.msra.mxu0 %v107_v6  ;;  %656 = vmatprep.subr.mxu1 %v336_v15  ;;  %v84_v35 = vld [vmem:[#allocation3 + $0x28] sm:$0xff]  ;;  %v85_v36 = vld [vmem:[#allocation3 + $0x30] sm:$0xff]  ;;  %v86_v37 = vld [vmem:[#allocation3 + $0x38] sm:$0xff] }
  0x32   :  { %604 = vmatprep.subr.mxu0 %v106_v7  ;;  %657 = vmatpush3.msra.mxu1 %v336_v15  ;;  %v87_v38 = vld [vmem:[#allocation3 + $0x40] sm:$0xff]  ;;  %v88_v39 = vld [vmem:[#allocation3 + $0x48] sm:$0xff]  ;;  %v89_v40 = vld [vmem:[#allocation3 + $0x50] sm:$0xff] }
  0x33   :  { %605 = vmatpush3.msra.mxu0 %v106_v7  ;;  %658 = vmatprep.subr.mxu1 %v335_v17  ;;  %v90_v41 = vld [vmem:[#allocation3 + $0x58] sm:$0xff]  ;;  %v91_v42 = vld [vmem:[#allocation3 + $0x60] sm:$0xff]  ;;  %v92_v43 = vld [vmem:[#allocation3 + $0x68] sm:$0xff] }
  0x34   :  { %606 = vmatprep.subr.mxu0 %v105_v10  ;;  %659 = vmatpush3.msra.mxu1 %v335_v17  ;;  %v93_v44 = vld [vmem:[#allocation3 + $0x70] sm:$0xff]  ;;  %v94_v45 = vld [vmem:[#allocation3 + $0x78] sm:$0xff]  ;;  %v326_v46 = vld [vmem:[#allocation8 + $0x8] sm:$0xff] }
  0x35   :  { %607 = vmatpush3.msra.mxu0 %v105_v10  ;;  %660 = vmatprep.subr.mxu1 %v334_v19  ;;  %v325_v47 = vld [vmem:[#allocation8] sm:$0xff] }
  0x36   :  { %608 = vmatprep.subr.mxu0 %v104_v12  ;;  %661 = vmatpush3.msra.mxu1 %v334_v19  ;;  %v527_v0 = vld [vmem:[%s857_s3] ss:$0 sm:$0xff]  ;;  %s801_s3 = smov [#allocation9]  }
  0x37   :  { %609 = vmatpush3.msra.mxu0 %v104_v12  ;;  %662 = vmatprep.subr.mxu1 %v333_v21  ;;  %s514_s5 = sshll.u32 %s801_s3, 4  ;;  %s515_s5 = int_to_ptr.vmem [resolvable:$true] %s514_s5 }
  0x38   :  { %610 = vmatprep.subr.mxu0 %v103_v14  ;;  %663 = vmatpush3.msra.mxu1 %v333_v21  ;;  %s770_s6 = scalar_lea.vmem %s515_s5, 2048  ;;  %p775_p2 = scmp.lt.s32.totalorder %s515_s5, %s515_s5 }
  0x39   :  { %611 = vmatpush3.msra.mxu0 %v103_v14  ;;  %664 = vmatprep.subr.mxu1 %v332_v23  ;;  %p771_p1 = scmp.ne.s32.totalorder %s515_s5, %s770_s6  ;;  %p776_p3 = scmp.lt.s32.totalorder %s770_s6, %s770_s6 }
  0x3a   :  { %612 = vmatprep.subr.mxu0 %v102_v16  ;;  %665 = vmatpush3.msra.mxu1 %v332_v23 }
  0x3b   :  { %613 = vmatpush3.msra.mxu0 %v102_v16  ;;  %666 = vmatprep.subr.mxu1 %v331_v25  ;;  %p777_p4 = por %p776_p3, %p775_p2 }
  0x3c   :  { %614 = vmatprep.subr.mxu0 %v101_v18  ;;  %667 = vmatpush3.msra.mxu1 %v331_v25 }
  0x3d   :  { %615 = vmatpush3.msra.mxu0 %v101_v18  ;;  %668 = vmatprep.subr.mxu1 %v330_v27  ;;  %p778_p5 = pnand %p777_p4, %p771_p1 }
  0x3e   :  { %616 = vmatprep.subr.mxu0 %v100_v20  ;;  %669 = vmatpush3.msra.mxu1 %v330_v27 }
  0x3f   :  { %617 = vmatpush3.msra.mxu0 %v100_v20  ;;  %670 = vmatprep.subr.mxu1 %v329_v29 }
  0x40   :  { %618 = vmatprep.subr.mxu0 %v99_v22  ;;  %671 = vmatpush3.msra.mxu1 %v329_v29 }
  0x41   :  { %619 = vmatpush3.msra.mxu0 %v99_v22  ;;  %672 = vmatprep.subr.mxu1 %v328_v31 }
  0x42   :  { %620 = vmatprep.subr.mxu0 %v98_v24  ;;  %673 = vmatpush3.msra.mxu1 %v328_v31 }
  0x43   :  { %621 = vmatpush3.msra.mxu0 %v98_v24  ;;  %674 = vmatprep.subr.mxu1 %v327_v33 }
  0x44   :  { %622 = vmatprep.subr.mxu0 %v97_v26  ;;  %675 = vmatpush3.msra.mxu1 %v327_v33 }
  0x45   :  { %623 = vmatpush3.msra.mxu0 %v97_v26  ;;  %676 = vmatprep.subr.mxu1 %v326_v46 }
  0x46   :  { %625 = vmatmul.mubr.f32.vlgmr.msra.gmra.mxu0 %v80_v28  ;;  %677 = vmatpush3.msra.mxu1 %v326_v46 }
  0x47   :  { %627 = vmatprep.mubr.f32.mxu0 %v81_v30  ;;  %678 = vmatprep.subr.mxu1 %v325_v47 }
  0x48   :  { %679 = vmatpush3.msra.mxu1 %v325_v47 }
  0x4a   :  { %628 = vmatmul.mubr.f32.gmra.mxu0 %v82_v32 }
  0x4b   :  { %630 = vmatprep.mubr.f32.mxu0 %v83_v34 }
  0x4e   :  { %631 = vmatmul.mubr.f32.gmra.mxu0 %v84_v35 }
  0x4f   :  { %633 = vmatprep.mubr.f32.mxu0 %v85_v36 }
  0x52   :  { %634 = vmatmul.mubr.f32.gmra.mxu0 %v86_v37 }
  0x53   :  { %636 = vmatprep.mubr.f32.mxu0 %v87_v38 }
  0x56   :  { %637 = vmatmul.mubr.f32.gmra.mxu0 %v88_v39 }
  0x57   :  { %639 = vmatprep.mubr.f32.mxu0 %v89_v40 }
  0x5a   :  { %640 = vmatmul.mubr.f32.gmra.mxu0 %v90_v41 }
  0x5b   :  { %642 = vmatprep.mubr.f32.mxu0 %v91_v42 }
  0x5e   :  { %643 = vmatmul.mubr.f32.gmra.mxu0 %v92_v43 }
  0x5f   :  { %645 = vmatprep.mubr.f32.mxu0 %v93_v44 }
  0x62   :  { %646 = vmatmul.mubr.f32.gmra.mxu0 %v94_v45 }
 0x106   :  { %v626_v48 = vpop.f32.mrf.mxu0 }
 0x108   :  { %v195_v49 = vpop.f32.mrf.mxu0 }
 0x109   :  { %680 = vmatprep.mubr.f32.mxu1 %v195_v49 }
 0x10a   :  { %v629_v50 = vpop.f32.mrf.mxu0  ;;  %681 = vmatmul.mubr.f32.vlgmr.msra.gmra.mxu1 %v626_v48 }
 0x10c   :  { %v205_v51 = vpop.f32.mrf.mxu0 }
 0x10d   :  { %683 = vmatprep.mubr.f32.mxu1 %v205_v51 }
 0x10e   :  { %v632_v52 = vpop.f32.mrf.mxu0  ;;  %684 = vmatmul.mubr.f32.gmra.mxu1 %v629_v50 }
 0x110   :  { %v215_v53 = vpop.f32.mrf.mxu0 }
 0x111   :  { %686 = vmatprep.mubr.f32.mxu1 %v215_v53 }
 0x112   :  { %v635_v54 = vpop.f32.mrf.mxu0  ;;  %687 = vmatmul.mubr.f32.gmra.mxu1 %v632_v52 }
 0x114   :  { %v225_v55 = vpop.f32.mrf.mxu0 }
 0x115   :  { %689 = vmatprep.mubr.f32.mxu1 %v225_v55 }
 0x116   :  { %v638_v56 = vpop.f32.mrf.mxu0  ;;  %690 = vmatmul.mubr.f32.gmra.mxu1 %v635_v54 }
 0x118   :  { %v235_v57 = vpop.f32.mrf.mxu0 }
 0x119   :  { %692 = vmatprep.mubr.f32.mxu1 %v235_v57 }
 0x11a   :  { %v641_v58 = vpop.f32.mrf.mxu0  ;;  %693 = vmatmul.mubr.f32.gmra.mxu1 %v638_v56 }
 0x11c   :  { %v245_v59 = vpop.f32.mrf.mxu0 }
 0x11d   :  { %695 = vmatprep.mubr.f32.mxu1 %v245_v59 }
 0x11e   :  { %v644_v60 = vpop.f32.mrf.mxu0  ;;  %696 = vmatmul.mubr.f32.gmra.mxu1 %v641_v58 }
 0x120   :  { %v255_v61 = vpop.f32.mrf.mxu0 }
 0x121   :  { %698 = vmatprep.mubr.f32.mxu1 %v255_v61 }
 0x122   :  { %v647_v62 = vpop.f32.mrf.mxu0  ;;  %699 = vmatmul.mubr.f32.gmra.mxu1 %v644_v60 }
 0x124   :  { %v265_v63 = vpop.f32.mrf.mxu0 }
 0x125   :  { %701 = vmatprep.mubr.f32.mxu1 %v265_v63 }
 0x126   :  { %702 = vmatmul.mubr.f32.gmra.mxu1 %v647_v62 }
 0x1ca   :  { %v682_v1 = vpop.f32.mrf.mxu1 }
 0x1cb   :  { %v420_v2 = vadd.f32 %v682_v1, %v527_v0 }
 0x1cc   :  { %v414_v3 = vpop.f32.mrf.mxu1 }
 0x1cd   :  { %494 = vst [vmem:[#allocation9 + $0x8] sm:$0xff] %v420_v2  ;;  %v415_v4 = vadd.f32 %v527_v0, %v414_v3 }
 0x1ce   :  { %v685_v5 = vpop.f32.mrf.mxu1 }
 0x1cf   :  { %493 = vst [vmem:[#allocation9] sm:$0xff] %v415_v4  ;;  %v430_v6 = vadd.f32 %v685_v5, %v527_v0 }
 0x1d0   :  { %v424_v7 = vpop.f32.mrf.mxu1 }
 0x1d1   :  { %496 = vst [vmem:[#allocation9 + $0x18] sm:$0xff] %v430_v6  ;;  %v425_v8 = vadd.f32 %v527_v0, %v424_v7 }
 0x1d2   :  { %v688_v9 = vpop.f32.mrf.mxu1 }
 0x1d3   :  { %495 = vst [vmem:[#allocation9 + $0x10] sm:$0xff] %v425_v8  ;;  %v440_v10 = vadd.f32 %v688_v9, %v527_v0 }
 0x1d4   :  { %v434_v11 = vpop.f32.mrf.mxu1 }
 0x1d5   :  { %498 = vst [vmem:[#allocation9 + $0x28] sm:$0xff] %v440_v10  ;;  %v435_v12 = vadd.f32 %v527_v0, %v434_v11 }
 0x1d6   :  { %v691_v13 = vpop.f32.mrf.mxu1 }
 0x1d7   :  { %497 = vst [vmem:[#allocation9 + $0x20] sm:$0xff] %v435_v12  ;;  %v450_v14 = vadd.f32 %v691_v13, %v527_v0 }
 0x1d8   :  { %v444_v15 = vpop.f32.mrf.mxu1 }
 0x1d9   :  { %500 = vst [vmem:[#allocation9 + $0x38] sm:$0xff] %v450_v14  ;;  %v445_v16 = vadd.f32 %v527_v0, %v444_v15 }
 0x1da   :  { %v694_v17 = vpop.f32.mrf.mxu1 }
 0x1db   :  { %499 = vst [vmem:[#allocation9 + $0x30] sm:$0xff] %v445_v16  ;;  %v460_v18 = vadd.f32 %v694_v17, %v527_v0 }
 0x1dc   :  { %v454_v19 = vpop.f32.mrf.mxu1 }
 0x1dd   :  { %502 = vst [vmem:[#allocation9 + $0x48] sm:$0xff] %v460_v18  ;;  %v455_v20 = vadd.f32 %v527_v0, %v454_v19 }
 0x1de   :  { %v697_v21 = vpop.f32.mrf.mxu1 }
 0x1df   :  { %501 = vst [vmem:[#allocation9 + $0x40] sm:$0xff] %v455_v20  ;;  %v470_v22 = vadd.f32 %v697_v21, %v527_v0 }
 0x1e0   :  { %v464_v23 = vpop.f32.mrf.mxu1 }
 0x1e1   :  { %504 = vst [vmem:[#allocation9 + $0x58] sm:$0xff] %v470_v22  ;;  %v465_v24 = vadd.f32 %v527_v0, %v464_v23 }
 0x1e2   :  { %v700_v25 = vpop.f32.mrf.mxu1 }
 0x1e3   :  { %503 = vst [vmem:[#allocation9 + $0x50] sm:$0xff] %v465_v24  ;;  %v480_v26 = vadd.f32 %v700_v25, %v527_v0 }
 0x1e4   :  { %v474_v27 = vpop.f32.mrf.mxu1 }
 0x1e5   :  { %506 = vst [vmem:[#allocation9 + $0x68] sm:$0xff] %v480_v26  ;;  %v475_v28 = vadd.f32 %v527_v0, %v474_v27 }
 0x1e6   :  { %v703_v29 = vpop.f32.mrf.mxu1 }
 0x1e7   :  { %505 = vst [vmem:[#allocation9 + $0x60] sm:$0xff] %v475_v28  ;;  %v490_v30 = vadd.f32 %v703_v29, %v527_v0 }
 0x1e8   :  { %v484_v31 = vpop.f32.mrf.mxu1 }
 0x1e9   :  { %508 = vst [vmem:[#allocation9 + $0x78] sm:$0xff] %v490_v30  ;;  %v485_v32 = vadd.f32 %v527_v0, %v484_v31 }
 0x1eb   :  { %507 = vst [vmem:[#allocation9 + $0x70] sm:$0xff] %v485_v32 }
 0x1ec   :  { %781 = shalt.err (!%p778_p5)
}
 0x1ed   :  { %520 = dma.vmem_to_hbm [thread:$0]  %s515_s5, 2048, %s858_s4, [#allocation5], %s798_s20, %s798_s20, %s799_s21  }
 0x1ee   :  { %794 = dma.done.wait [#allocation5], 2048  }
 0x1ef   :  { %795 = vsyncadd [#allocation5], 4294965248 }
 0x1f0   :  { %524 = vsyncpa [#allocation4], 1 }
 0x1f1   :  { %525 = vsyncpa [#allocation7], 1 }
 0x1f2   :  { %526 = vsyncpa [#allocation5], 1 }

// kernel: tpu_custom_call.1
= control target key start
LH: loop header
LB: loop body
LE: loop exit
PB: predicated region body
PF: predicated region fallthrough
CT: control target
= control target key end

     0   :  { %9 = vsyncpa [#allocation4], 0  ;;  %s854_s0 = inlined_call_operand.hbm [shape: f32[128,128], index: 0, kind: input, shape index: {}]   ;;  %s855_s1 = inlined_call_operand.hbm [shape: f32[128,128], index: 1, kind: input, shape index: {}]   ;;  %s856_s2 = inlined_call_operand.hbm [shape: f32[128,128], index: 2, kind: input, shape index: {}]   ;;  %s857_s3 = inlined_call_operand.vmem [shape: f32[1,128], index: 3, kind: input, shape index: {}]   ;;  %s858_s4 = inlined_call_operand.hbm [shape: f32[128,128], index: 4, kind: output, shape index: {}]  }
   0x1   :  { %10 = vsyncpa [#allocation7], 0 }
   0x2   :  { %11 = vsyncpa [#allocation5], 0  ;;  %s796_s15 = smov [#allocation6]   ;;  %s797_s17 = smov [#allocation3]  }
   0x3   :  { %s29_s16 = sshll.u32 %s796_s15, 4  ;;  %s17_s18 = sshll.u32 %s797_s17, 4  ;;  %s30_s16 = int_to_ptr.vmem [resolvable:$true] %s29_s16  ;;  %s18_s18 = int_to_ptr.vmem [resolvable:$true] %s17_s18 }
   0x4   :  { %s718_s19 = scalar_lea.vmem %s30_s16, 2048  ;;  %p723_p1 = scmp.lt.s32.totalorder %s30_s16, %s30_s16 }
   0x5   :  { %p719_p0 = scmp.ne.s32.totalorder %s30_s16, %s718_s19  ;;  %p724_p2 = scmp.lt.s32.totalorder %s718_s19, %s718_s19 }
   0x7   :  { %p725_p3 = por %p724_p2, %p723_p1 }
   0x9   :  { %p726_p4 = pnand %p725_p3, %p719_p0 }
   0xb   :  { %729 = shalt.err (!%p726_p4)
}
   0xc   :  { %s798_s20 = smov 128   ;;  %s799_s21 = smov 8  }
   0xd   :  { %35 = dma.hbm_to_vmem [thread:$0]  %s855_s1, 2048, %s30_s16, [#allocation7], %s798_s20, %s798_s20, %s799_s21  }
   0xe   :  { %s738_s24 = scalar_lea.vmem %s18_s18, 2048  ;;  %p743_p6 = scmp.lt.s32.totalorder %s18_s18, %s18_s18 }
   0xf   :  { %p739_p5 = scmp.ne.s32.totalorder %s18_s18, %s738_s24  ;;  %p744_p7 = scmp.lt.s32.totalorder %s738_s24, %s738_s24 }
  0x11   :  { %p745_p8 = por %p744_p7, %p743_p6 }
  0x13   :  { %p746_p9 = pnand %p745_p8, %p739_p5 }
  0x15   :  { %749 = shalt.err (!%p746_p9)
}
  0x16   :  { %23 = dma.hbm_to_vmem [thread:$0]  %s854_s0, 2048, %s18_s18, [#allocation4], %s798_s20, %s798_s20, %s799_s21  }
  0x17   :  { %s800_s27 = smov [#allocation8]  }
  0x18   :  { %s41_s28 = sshll.u32 %s800_s27, 4  ;;  %s42_s28 = int_to_ptr.vmem [resolvable:$true] %s41_s28 }
  0x19   :  { %s758_s29 = scalar_lea.vmem %s42_s28, 2048  ;;  %p763_p11 = scmp.lt.s32.totalorder %s42_s28, %s42_s28 }
  0x1a   :  { %p759_p10 = scmp.ne.s32.totalorder %s42_s28, %s758_s29  ;;  %p764_p12 = scmp.lt.s32.totalorder %s758_s29, %s758_s29 }
  0x1c   :  { %p765_p13 = por %p764_p12, %p763_p11 }
  0x1e   :  { %p766_p0 = pnand %p765_p13, %p759_p10 }
  0x20   :  { %769 = shalt.err (!%p766_p0)
}
  0x21   :  { %47 = dma.hbm_to_vmem [thread:$0]  %s856_s2, 2048, %s42_s28, [#allocation7], %s798_s20, %s798_s20, %s799_s21  }
  0x22   :  { %790 = dma.done.wait [#allocation4], 2048  }
  0x23   :  { %791 = vsyncadd [#allocation4], 4294965248 }
  0x24   :  { %792 = dma.done.wait [#allocation7], 4096  }
  0x25   :  { %793 = vsyncadd [#allocation7], 4294963200  ;;  %v112_v0 = vld [vmem:[#allocation6 + $0x78] sm:$0xff]  ;;  %v111_v1 = vld [vmem:[#allocation6 + $0x70] sm:$0xff] }
  0x26   :  { %592 = vmatprep.subr.mxu0 %v112_v0  ;;  %v110_v2 = vld [vmem:[#allocation6 + $0x68] sm:$0xff]  ;;  %v109_v3 = vld [vmem:[#allocation6 + $0x60] sm:$0xff]  ;;  %v108_v5 = vld [vmem:[#allocation6 + $0x58] sm:$0xff] }
  0x27   :  { %593 = vmatpush3.msra.mxu0 %v112_v0  ;;  %v79_v4 = vld [vmem:[#allocation3] sm:$0xff]  ;;  %v107_v6 = vld [vmem:[#allocation6 + $0x50] sm:$0xff]  ;;  %v106_v7 = vld [vmem:[#allocation6 + $0x48] sm:$0xff] }
  0x28   :  { %594 = vmatprep.subr.mxu0 %v111_v1  ;;  %624 = vmatprep.mubr.f32.mxu0 %v79_v4  ;;  %v340_v8 = vld [vmem:[#allocation8 + $0x78] sm:$0xff]  ;;  %v339_v9 = vld [vmem:[#allocation8 + $0x70] sm:$0xff]  ;;  %v105_v10 = vld [vmem:[#allocation6 + $0x40] sm:$0xff] }
  0x29   :  { %595 = vmatpush3.msra.mxu0 %v111_v1  ;;  %648 = vmatprep.subr.mxu1 %v340_v8  ;;  %v338_v11 = vld [vmem:[#allocation8 + $0x68] sm:$0xff]  ;;  %v104_v12 = vld [vmem:[#allocation6 + $0x38] sm:$0xff]  ;;  %v337_v13 = vld [vmem:[#allocation8 + $0x60] sm:$0xff] }
  0x2a   :  { %596 = vmatprep.subr.mxu0 %v110_v2  ;;  %649 = vmatpush3.msra.mxu1 %v340_v8  ;;  %v103_v14 = vld [vmem:[#allocation6 + $0x30] sm:$0xff]  ;;  %v336_v15 = vld [vmem:[#allocation8 + $0x58] sm:$0xff]  ;;  %v102_v16 = vld [vmem:[#allocation6 + $0x28] sm:$0xff] }
  0x2b   :  { %597 = vmatpush3.msra.mxu0 %v110_v2  ;;  %650 = vmatprep.subr.mxu1 %v339_v9  ;;  %v335_v17 = vld [vmem:[#allocation8 + $0x50] sm:$0xff]  ;;  %v101_v18 = vld [vmem:[#allocation6 + $0x20] sm:$0xff]  ;;  %v334_v19 = vld [vmem:[#allocation8 + $0x48] sm:$0xff] }
  0x2c   :  { %598 = vmatprep.subr.mxu0 %v109_v3  ;;  %651 = vmatpush3.msra.mxu1 %v339_v9  ;;  %v100_v20 = vld [vmem:[#allocation6 + $0x18] sm:$0xff]  ;;  %v333_v21 = vld [vmem:[#allocation8 + $0x40] sm:$0xff]  ;;  %v99_v22 = vld [vmem:[#allocation6 + $0x10] sm:$0xff] }
  0x2d   :  { %599 = vmatpush3.msra.mxu0 %v109_v3  ;;  %652 = vmatprep.subr.mxu1 %v338_v11  ;;  %v332_v23 = vld [vmem:[#allocation8 + $0x38] sm:$0xff]  ;;  %v98_v24 = vld [vmem:[#allocation6 + $0x8] sm:$0xff]  ;;  %v331_v25 = vld [vmem:[#allocation8 + $0x30] sm:$0xff] }
  0x2e   :  { %600 = vmatprep.subr.mxu0 %v108_v5  ;;  %653 = vmatpush3.msra.mxu1 %v338_v11  ;;  %v97_v26 = vld [vmem:[#allocation6] sm:$0xff]  ;;  %v330_v27 = vld [vmem:[#allocation8 + $0x28] sm:$0xff]  ;;  %v81_v30 = vld [vmem:[#allocation3 + $0x10] sm:$0xff] }
  0x2f   :  { %601 = vmatpush3.msra.mxu0 %v108_v5  ;;  %654 = vmatprep.subr.mxu1 %v337_v13  ;;  %v80_v28 = vld [vmem:[#allocation3 + $0x8] sm:$0xff]  ;;  %v329_v29 = vld [vmem:[#allocation8 + $0x20] sm:$0xff]  ;;  %v328_v31 = vld [vmem:[#allocation8 + $0x18] sm:$0xff] }
  0x30   :  { %602 = vmatprep.subr.mxu0 %v107_v6  ;;  %655 = vmatpush3.msra.mxu1 %v337_v13  ;;  %v82_v32 = vld [vmem:[#allocation3 + $0x18] sm:$0xff]  ;;  %v327_v33 = vld [vmem:[#allocation8 + $0x10] sm:$0xff]  ;;  %v83_v34 = vld [vmem:[#allocation3 + $0x20] sm:$0xff] }
  0x31   :  { %603 = vmatpush3.msra.mxu0 %v107_v6  ;;  %656 = vmatprep.subr.mxu1 %v336_v15  ;;  %v84_v35 = vld [vmem:[#allocation3 + $0x28] sm:$0xff]  ;;  %v85_v36 = vld [vmem:[#allocation3 + $0x30] sm:$0xff]  ;;  %v86_v37 = vld [vmem:[#allocation3 + $0x38] sm:$0xff] }
  0x32   :  { %604 = vmatprep.subr.mxu0 %v106_v7  ;;  %657 = vmatpush3.msra.mxu1 %v336_v15  ;;  %v87_v38 = vld [vmem:[#allocation3 + $0x40] sm:$0xff]  ;;  %v88_v39 = vld [vmem:[#allocation3 + $0x48] sm:$0xff]  ;;  %v89_v40 = vld [vmem:[#allocation3 + $0x50] sm:$0xff] }
  0x33   :  { %605 = vmatpush3.msra.mxu0 %v106_v7  ;;  %658 = vmatprep.subr.mxu1 %v335_v17  ;;  %v90_v41 = vld [vmem:[#allocation3 + $0x58] sm:$0xff]  ;;  %v91_v42 = vld [vmem:[#allocation3 + $0x60] sm:$0xff]  ;;  %v92_v43 = vld [vmem:[#allocation3 + $0x68] sm:$0xff] }
  0x34   :  { %606 = vmatprep.subr.mxu0 %v105_v10  ;;  %659 = vmatpush3.msra.mxu1 %v335_v17  ;;  %v93_v44 = vld [vmem:[#allocation3 + $0x70] sm:$0xff]  ;;  %v94_v45 = vld [vmem:[#allocation3 + $0x78] sm:$0xff]  ;;  %v326_v46 = vld [vmem:[#allocation8 + $0x8] sm:$0xff] }
  0x35   :  { %607 = vmatpush3.msra.mxu0 %v105_v10  ;;  %660 = vmatprep.subr.mxu1 %v334_v19  ;;  %v325_v47 = vld [vmem:[#allocation8] sm:$0xff] }
  0x36   :  { %608 = vmatprep.subr.mxu0 %v104_v12  ;;  %661 = vmatpush3.msra.mxu1 %v334_v19  ;;  %v527_v0 = vld [vmem:[%s857_s3] ss:$0 sm:$0xff]  ;;  %s801_s3 = smov [#allocation9]  }
  0x37   :  { %609 = vmatpush3.msra.mxu0 %v104_v12  ;;  %662 = vmatprep.subr.mxu1 %v333_v21  ;;  %s514_s5 = sshll.u32 %s801_s3, 4  ;;  %s515_s5 = int_to_ptr.vmem [resolvable:$true] %s514_s5 }
  0x38   :  { %610 = vmatprep.subr.mxu0 %v103_v14  ;;  %663 = vmatpush3.msra.mxu1 %v333_v21  ;;  %s770_s6 = scalar_lea.vmem %s515_s5, 2048  ;;  %p775_p2 = scmp.lt.s32.totalorder %s515_s5, %s515_s5 }
  0x39   :  { %611 = vmatpush3.msra.mxu0 %v103_v14  ;;  %664 = vmatprep.subr.mxu1 %v332_v23  ;;  %p771_p1 = scmp.ne.s32.totalorder %s515_s5, %s770_s6  ;;  %p776_p3 = scmp.lt.s32.totalorder %s770_s6, %s770_s6 }
  0x3a   :  { %612 = vmatprep.subr.mxu0 %v102_v16  ;;  %665 = vmatpush3.msra.mxu1 %v332_v23 }
  0x3b   :  { %613 = vmatpush3.msra.mxu0 %v102_v16  ;;  %666 = vmatprep.subr.mxu1 %v331_v25  ;;  %p777_p4 = por %p776_p3, %p775_p2 }
  0x3c   :  { %614 = vmatprep.subr.mxu0 %v101_v18  ;;  %667 = vmatpush3.msra.mxu1 %v331_v25 }
  0x3d   :  { %615 = vmatpush3.msra.mxu0 %v101_v18  ;;  %668 = vmatprep.subr.mxu1 %v330_v27  ;;  %p778_p5 = pnand %p777_p4, %p771_p1 }
  0x3e   :  { %616 = vmatprep.subr.mxu0 %v100_v20  ;;  %669 = vmatpush3.msra.mxu1 %v330_v27 }
  0x3f   :  { %617 = vmatpush3.msra.mxu0 %v100_v20  ;;  %670 = vmatprep.subr.mxu1 %v329_v29 }
  0x40   :  { %618 = vmatprep.subr.mxu0 %v99_v22  ;;  %671 = vmatpush3.msra.mxu1 %v329_v29 }
  0x41   :  { %619 = vmatpush3.msra.mxu0 %v99_v22  ;;  %672 = vmatprep.subr.mxu1 %v328_v31 }
  0x42   :  { %620 = vmatprep.subr.mxu0 %v98_v24  ;;  %673 = vmatpush3.msra.mxu1 %v328_v31 }
  0x43   :  { %621 = vmatpush3.msra.mxu0 %v98_v24  ;;  %674 = vmatprep.subr.mxu1 %v327_v33 }
  0x44   :  { %622 = vmatprep.subr.mxu0 %v97_v26  ;;  %675 = vmatpush3.msra.mxu1 %v327_v33 }
  0x45   :  { %623 = vmatpush3.msra.mxu0 %v97_v26  ;;  %676 = vmatprep.subr.mxu1 %v326_v46 }
  0x46   :  { %625 = vmatmul.mubr.f32.vlgmr.msra.gmra.mxu0 %v80_v28  ;;  %677 = vmatpush3.msra.mxu1 %v326_v46 }
  0x47   :  { %627 = vmatprep.mubr.f32.mxu0 %v81_v30  ;;  %678 = vmatprep.subr.mxu1 %v325_v47 }
  0x48   :  { %679 = vmatpush3.msra.mxu1 %v325_v47 }
  0x4a   :  { %628 = vmatmul.mubr.f32.gmra.mxu0 %v82_v32 }
  0x4b   :  { %630 = vmatprep.mubr.f32.mxu0 %v83_v34 }
  0x4e   :  { %631 = vmatmul.mubr.f32.gmra.mxu0 %v84_v35 }
  0x4f   :  { %633 = vmatprep.mubr.f32.mxu0 %v85_v36 }
  0x52   :  { %634 = vmatmul.mubr.f32.gmra.mxu0 %v86_v37 }
  0x53   :  { %636 = vmatprep.mubr.f32.mxu0 %v87_v38 }
  0x56   :  { %637 = vmatmul.mubr.f32.gmra.mxu0 %v88_v39 }
  0x57   :  { %639 = vmatprep.mubr.f32.mxu0 %v89_v40 }
  0x5a   :  { %640 = vmatmul.mubr.f32.gmra.mxu0 %v90_v41 }
  0x5b   :  { %642 = vmatprep.mubr.f32.mxu0 %v91_v42 }
  0x5e   :  { %643 = vmatmul.mubr.f32.gmra.mxu0 %v92_v43 }
  0x5f   :  { %645 = vmatprep.mubr.f32.mxu0 %v93_v44 }
  0x62   :  { %646 = vmatmul.mubr.f32.gmra.mxu0 %v94_v45 }
 0x106   :  { %v626_v48 = vpop.f32.mrf.mxu0 }
 0x108   :  { %v195_v49 = vpop.f32.mrf.mxu0 }
 0x109   :  { %680 = vmatprep.mubr.f32.mxu1 %v195_v49 }
 0x10a   :  { %v629_v50 = vpop.f32.mrf.mxu0  ;;  %681 = vmatmul.mubr.f32.vlgmr.msra.gmra.mxu1 %v626_v48 }
 0x10c   :  { %v205_v51 = vpop.f32.mrf.mxu0 }
 0x10d   :  { %683 = vmatprep.mubr.f32.mxu1 %v205_v51 }
 0x10e   :  { %v632_v52 = vpop.f32.mrf.mxu0  ;;  %684 = vmatmul.mubr.f32.gmra.mxu1 %v629_v50 }
 0x110   :  { %v215_v53 = vpop.f32.mrf.mxu0 }
 0x111   :  { %686 = vmatprep.mubr.f32.mxu1 %v215_v53 }
 0x112   :  { %v635_v54 = vpop.f32.mrf.mxu0  ;;  %687 = vmatmul.mubr.f32.gmra.mxu1 %v632_v52 }
 0x114   :  { %v225_v55 = vpop.f32.mrf.mxu0 }
 0x115   :  { %689 = vmatprep.mubr.f32.mxu1 %v225_v55 }
 0x116   :  { %v638_v56 = vpop.f32.mrf.mxu0  ;;  %690 = vmatmul.mubr.f32.gmra.mxu1 %v635_v54 }
 0x118   :  { %v235_v57 = vpop.f32.mrf.mxu0 }
 0x119   :  { %692 = vmatprep.mubr.f32.mxu1 %v235_v57 }
 0x11a   :  { %v641_v58 = vpop.f32.mrf.mxu0  ;;  %693 = vmatmul.mubr.f32.gmra.mxu1 %v638_v56 }
 0x11c   :  { %v245_v59 = vpop.f32.mrf.mxu0 }
 0x11d   :  { %695 = vmatprep.mubr.f32.mxu1 %v245_v59 }
 0x11e   :  { %v644_v60 = vpop.f32.mrf.mxu0  ;;  %696 = vmatmul.mubr.f32.gmra.mxu1 %v641_v58 }
 0x120   :  { %v255_v61 = vpop.f32.mrf.mxu0 }
 0x121   :  { %698 = vmatprep.mubr.f32.mxu1 %v255_v61 }
 0x122   :  { %v647_v62 = vpop.f32.mrf.mxu0  ;;  %699 = vmatmul.mubr.f32.gmra.mxu1 %v644_v60 }
 0x124   :  { %v265_v63 = vpop.f32.mrf.mxu0 }
 0x125   :  { %701 = vmatprep.mubr.f32.mxu1 %v265_v63 }
 0x126   :  { %702 = vmatmul.mubr.f32.gmra.mxu1 %v647_v62 }
 0x1ca   :  { %v682_v1 = vpop.f32.mrf.mxu1 }
 0x1cb   :  { %v420_v2 = vadd.f32 %v682_v1, %v527_v0 }
 0x1cc   :  { %v414_v3 = vpop.f32.mrf.mxu1 }
 0x1cd   :  { %494 = vst [vmem:[#allocation9 + $0x8] sm:$0xff] %v420_v2  ;;  %v415_v4 = vadd.f32 %v527_v0, %v414_v3 }
 0x1ce   :  { %v685_v5 = vpop.f32.mrf.mxu1 }
 0x1cf   :  { %493 = vst [vmem:[#allocation9] sm:$0xff] %v415_v4  ;;  %v430_v6 = vadd.f32 %v685_v5, %v527_v0 }
 0x1d0   :  { %v424_v7 = vpop.f32.mrf.mxu1 }
 0x1d1   :  { %496 = vst [vmem:[#allocation9 + $0x18] sm:$0xff] %v430_v6  ;;  %v425_v8 = vadd.f32 %v527_v0, %v424_v7 }
 0x1d2   :  { %v688_v9 = vpop.f32.mrf.mxu1 }
 0x1d3   :  { %495 = vst [vmem:[#allocation9 + $0x10] sm:$0xff] %v425_v8  ;;  %v440_v10 = vadd.f32 %v688_v9, %v527_v0 }
 0x1d4   :  { %v434_v11 = vpop.f32.mrf.mxu1 }
 0x1d5   :  { %498 = vst [vmem:[#allocation9 + $0x28] sm:$0xff] %v440_v10  ;;  %v435_v12 = vadd.f32 %v527_v0, %v434_v11 }
 0x1d6   :  { %v691_v13 = vpop.f32.mrf.mxu1 }
 0x1d7   :  { %497 = vst [vmem:[#allocation9 + $0x20] sm:$0xff] %v435_v12  ;;  %v450_v14 = vadd.f32 %v691_v13, %v527_v0 }
 0x1d8   :  { %v444_v15 = vpop.f32.mrf.mxu1 }
 0x1d9   :  { %500 = vst [vmem:[#allocation9 + $0x38] sm:$0xff] %v450_v14  ;;  %v445_v16 = vadd.f32 %v527_v0, %v444_v15 }
 0x1da   :  { %v694_v17 = vpop.f32.mrf.mxu1 }
 0x1db   :  { %499 = vst [vmem:[#allocation9 + $0x30] sm:$0xff] %v445_v16  ;;  %v460_v18 = vadd.f32 %v694_v17, %v527_v0 }
 0x1dc   :  { %v454_v19 = vpop.f32.mrf.mxu1 }
 0x1dd   :  { %502 = vst [vmem:[#allocation9 + $0x48] sm:$0xff] %v460_v18  ;;  %v455_v20 = vadd.f32 %v527_v0, %v454_v19 }
 0x1de   :  { %v697_v21 = vpop.f32.mrf.mxu1 }
 0x1df   :  { %501 = vst [vmem:[#allocation9 + $0x40] sm:$0xff] %v455_v20  ;;  %v470_v22 = vadd.f32 %v697_v21, %v527_v0 }
 0x1e0   :  { %v464_v23 = vpop.f32.mrf.mxu1 }
 0x1e1   :  { %504 = vst [vmem:[#allocation9 + $0x58] sm:$0xff] %v470_v22  ;;  %v465_v24 = vadd.f32 %v527_v0, %v464_v23 }
 0x1e2   :  { %v700_v25 = vpop.f32.mrf.mxu1 }
 0x1e3   :  { %503 = vst [vmem:[#allocation9 + $0x50] sm:$0xff] %v465_v24  ;;  %v480_v26 = vadd.f32 %v700_v25, %v527_v0 }
 0x1e4   :  { %v474_v27 = vpop.f32.mrf.mxu1 }
 0x1e5   :  { %506 = vst [vmem:[#allocation9 + $0x68] sm:$0xff] %v480_v26  ;;  %v475_v28 = vadd.f32 %v527_v0, %v474_v27 }
 0x1e6   :  { %v703_v29 = vpop.f32.mrf.mxu1 }
 0x1e7   :  { %505 = vst [vmem:[#allocation9 + $0x60] sm:$0xff] %v475_v28  ;;  %v490_v30 = vadd.f32 %v703_v29, %v527_v0 }
 0x1e8   :  { %v484_v31 = vpop.f32.mrf.mxu1 }
 0x1e9   :  { %508 = vst [vmem:[#allocation9 + $0x78] sm:$0xff] %v490_v30  ;;  %v485_v32 = vadd.f32 %v527_v0, %v484_v31 }
 0x1eb   :  { %507 = vst [vmem:[#allocation9 + $0x70] sm:$0xff] %v485_v32 }
 0x1ec   :  { %781 = shalt.err (!%p778_p5)
}
 0x1ed   :  { %520 = dma.vmem_to_hbm [thread:$0]  %s515_s5, 2048, %s858_s4, [#allocation5], %s798_s20, %s798_s20, %s799_s21  }
 0x1ee   :  { %794 = dma.done.wait [#allocation5], 2048  }
 0x1ef   :  { %795 = vsyncadd [#allocation5], 4294965248 }
 0x1f0   :  { %524 = vsyncpa [#allocation4], 1 }
 0x1f1   :  { %525 = vsyncpa [#allocation7], 1 }
 0x1f2   :  { %526 = vsyncpa [#allocation5], 1 }

</bundles_post_ra>
